<compile_context>
chip_gen: v7x
topology: tpu7x:2x2x1
jax: 0.10.0
libtpu: 0.0.40
codegen_flags: <defaults>
</compile_context>

<pallas_src>
import jax
import jax.numpy as jnp
from jax.experimental import pallas as pl
from jax.experimental.pallas import tpu as pltpu


def _conv1x1_nchw_kernel(x_ref, w_ref, b_ref, o_ref):
    # x_ref: (1, C_in, T)   current image, tile of T pixel columns
    # w_ref: (C_out, C_in)  resident (constant index_map -> no re-DMA per step)
    # b_ref: (C_out, 1)
    # o_ref: (1, C_out, T)  lane-dense output tile
    acc = jnp.dot(w_ref[...], x_ref[0],
                  preferred_element_type=jnp.float32)      # (C_out, T) on the MXU
    o_ref[0] = (acc + b_ref[...]).astype(o_ref.dtype)


def conv1x1_nchw(x3, w_mat, b_col, *, max_tile=2048):
    """1x1 conv as an NCHW-native channel matmul.

    x3:    (N, C_in, HW) f32
    w_mat: (C_out, C_in)
    b_col: (C_out, 1)
    returns (N, C_out, HW)
    """
    n, c_in, hw = x3.shape
    c_out = w_mat.shape[0]

    # Lane-dense pixel tile: either the full HW extent (always legal: block dim
    # == full array dim) or a 128-multiple tile with a cdiv grid + masked tail.
    t = hw if hw <= max_tile else max_tile
    grid = (n, pl.cdiv(hw, t))

    return pl.pallas_call(
        _conv1x1_nchw_kernel,
        out_shape=jax.ShapeDtypeStruct((n, c_out, hw), x3.dtype),
        grid=grid,
        in_specs=[
            pl.BlockSpec((1, c_in, t), lambda i, j: (i, 0, j)),   # activations
            pl.BlockSpec((c_out, c_in), lambda i, j: (0, 0)),     # weight (resident)
            pl.BlockSpec((c_out, 1), lambda i, j: (0, 0)),        # bias (resident)
        ],
        out_specs=pl.BlockSpec((1, c_out, t), lambda i, j: (i, 0, j)),
        compiler_params=pltpu.CompilerParams(
            dimension_semantics=("parallel", "parallel"),
        ),
    )(x3, w_mat, b_col)


def detect_forward(x_list, weight_oihw, bias):
    """Pallas equivalent of Detect.forward.

    x_list:      list of NCHW f32 arrays with C == 256.
    weight_oihw: (C_out, C_in, 1, 1) PyTorch-convention conv weight.
    bias:        (C_out,)
    Returns a list of NCHW arrays with C == C_out.
    """
    c_out, c_in = weight_oihw.shape[0], weight_oihw.shape[1]
    w_mat = weight_oihw.reshape(c_out, c_in)   # OIHW(1x1) -> (C_out, C_in), no transpose
    b_col = bias.reshape(c_out, 1)

    # NOTE: scales are launched separately (one pallas_call each); fusing them
    # into a single launch would require concatenating the pixel axes (an extra
    # HBM copy) or manual DMA from pl.ANY refs, which is not worth it at these
    # sizes.  Each launch already has a multi-step "parallel" grid.
    outs = []
    for xi in x_list:
        n, c, h, w = xi.shape
        assert c == c_in
        x3 = xi.reshape(n, c, h * w)                  # free reshape (NCHW-native)
        y3 = conv1x1_nchw(x3, w_mat, b_col)
        outs.append(y3.reshape(n, c_out, h, w))       # free reshape back to NCHW
    return outs


if __name__ == "__main__":
    num_classes = 3
    c_in = 256
    c_out = (5 + num_classes) * 3  # 24

    key = jax.random.PRNGKey(0)
    kw, kb, k0, k1, k2 = jax.random.split(key, 5)

    # Deterministic synthetic parameters (PyTorch conv weight layout OIHW).
    weight = jax.random.normal(kw, (c_out, c_in, 1, 1), dtype=jnp.float32) * 0.02
    bias = jax.random.normal(kb, (c_out,), dtype=jnp.float32) * 0.02

    # Multi-scale feature-map list (Detect.forward expects List[Tensor]):
    #   HW=64   -> smaller than a lane tile, full-extent block
    #   HW=256  -> single 128-aligned lane-dense block
    #   HW=3136 -> multiple pixel tiles with an uneven (cdiv) tail
    x_list = [
        jax.random.normal(k0, (2, c_in, 8, 8), dtype=jnp.float32),
        jax.random.normal(k1, (2, c_in, 16, 16), dtype=jnp.float32),
        jax.random.normal(k2, (1, c_in, 56, 56), dtype=jnp.float32),
    ]

    outs = detect_forward(x_list, weight, bias)
    outs = [jax.block_until_ready(o) for o in outs]

    # Sanity check against a plain-JAX reference (1x1 conv == channel matmul).
    w_mat = weight.reshape(c_out, c_in)
    for xi, yi in zip(x_list, outs):
        n, c, h, w = xi.shape
        ref = jnp.einsum("oc,ncp->nop", w_mat, xi.reshape(n, c, h * w)) \
            + bias[None, :, None]
        ref = ref.reshape(n, c_out, h, w)
        assert yi.shape == (n, c_out, h, w)
        assert jnp.allclose(yi, ref, atol=2e-4, rtol=2e-4), \
            float(jnp.max(jnp.abs(yi - ref)))

    print("KERNEL_OK")
</pallas_src>

<mosaic_0001>
module attributes {stable_mosaic.version = 11 : i64} {
  func.func @_conv1x1_nchw_kernel(%arg0: i32, %arg1: i32, %arg2: memref<1x256x64xf32, #tpu.memory_space<vmem>>, %arg3: memref<24x256xf32, #tpu.memory_space<vmem>>, %arg4: memref<24x1xf32, #tpu.memory_space<vmem>>, %arg5: memref<1x24x64xf32, #tpu.memory_space<vmem>>) attributes {dimension_semantics = [#tpu.dimension_semantics<parallel>, #tpu.dimension_semantics<parallel>], iteration_bounds = array<i64: 2, 1>, scalar_prefetch = 0 : i64, scratch_operands = 0 : i64, tpu.core_type = #tpu.core_type<tc>, window_params = [{transform_indices = @transform_0, window_bounds = array<i64: 1, 256, 64>}, {pipeline_mode = #tpu.pipeline_mode<synchronous>, transform_indices = @transform_1, window_bounds = array<i64: 24, 256>}, {pipeline_mode = #tpu.pipeline_mode<synchronous>, transform_indices = @transform_2, window_bounds = array<i64: 24, 1>}, {transform_indices = @transform_3, window_bounds = array<i64: 1, 24, 64>}]} {
    %c0 = arith.constant 0 : index
    %c0_0 = arith.constant 0 : index
    %0 = vector.load %arg3[%c0, %c0_0] : memref<24x256xf32, #tpu.memory_space<vmem>>, vector<24x256xf32>
    %c0_1 = arith.constant 0 : index
    %c0_2 = arith.constant 0 : index
    %c0_3 = arith.constant 0 : index
    %1 = vector.load %arg2[%c0_1, %c0_2, %c0_3] : memref<1x256x64xf32, #tpu.memory_space<vmem>>, vector<1x256x64xf32>
    %2 = vector.shape_cast %1 : vector<1x256x64xf32> to vector<256x64xf32>
    %cst = arith.constant dense<0.000000e+00> : vector<24x64xf32>
    %3 = tpu.matmul %0, %2, %cst {dimension_numbers = #tpu.dot_dimension_numbers<[1], [0], [0], [1], [0, 0, 1, 1], [], []>} : vector<24x256xf32>, vector<256x64xf32>, vector<24x64xf32> -> vector<24x64xf32>
    %c0_4 = arith.constant 0 : index
    %c0_5 = arith.constant 0 : index
    %4 = vector.load %arg4[%c0_4, %c0_5] : memref<24x1xf32, #tpu.memory_space<vmem>>, vector<24x1xf32>
    %5 = vector.broadcast %4 : vector<24x1xf32> to vector<24x64xf32>
    %6 = arith.addf %3, %5 : vector<24x64xf32>
    %c0_6 = arith.constant 0 : index
    %c0_7 = arith.constant 0 : index
    %c0_8 = arith.constant 0 : index
    %7 = vector.load %arg5[%c0_6, %c0_7, %c0_8] : memref<1x24x64xf32, #tpu.memory_space<vmem>>, vector<1x24x64xf32>
    %8 = vector.shape_cast %7 : vector<1x24x64xf32> to vector<24x64xf32>
    %9 = vector.shape_cast %6 : vector<24x64xf32> to vector<1x24x64xf32>
    tpu.vector_store %arg5[%c0_6, %c0_7, %c0_8], %9 {strides = array<i32>} : memref<1x24x64xf32, #tpu.memory_space<vmem>>, vector<1x24x64xf32>,
    return
  }
  func.func @transform_0(%arg0: i32, %arg1: i32) -> (i32, i32, i32) {
    %c0_i32 = arith.constant 0 : i32
    %c0_i32_0 = arith.constant 0 : i32
    return %arg0, %c0_i32, %arg1 : i32, i32, i32
  }
  func.func @transform_1(%arg0: i32, %arg1: i32) -> (i32, i32) {
    %c0_i32 = arith.constant 0 : i32
    %c0_i32_0 = arith.constant 0 : i32
    %c0_i32_1 = arith.constant 0 : i32
    return %c0_i32, %c0_i32_0 : i32, i32
  }
  func.func @transform_2(%arg0: i32, %arg1: i32) -> (i32, i32) {
    %c0_i32 = arith.constant 0 : i32
    %c0_i32_0 = arith.constant 0 : i32
    %c0_i32_1 = arith.constant 0 : i32
    return %c0_i32, %c0_i32_0 : i32, i32
  }
  func.func @transform_3(%arg0: i32, %arg1: i32) -> (i32, i32, i32) {
    %c0_i32 = arith.constant 0 : i32
    %c0_i32_0 = arith.constant 0 : i32
    return %arg0, %c0_i32, %arg1 : i32, i32, i32
  }
}

</mosaic_0001>

<bundles_post_ra>
// kernel: tpu_custom_call.1
= control target key start
LH: loop header
LB: loop body
LE: loop exit
PB: predicated region body
PF: predicated region fallthrough
CT: control target
= control target key end

     0   :  { %8 = vsyncpa [#allocation3], 0  ;;  %s869_s0 = inlined_call_operand.vmem [shape: f32[2,256,64], index: 0, kind: input, shape index: {}]   ;;  %s870_s1 = inlined_call_operand.vmem [shape: f32[24,256], index: 1, kind: input, shape index: {}]   ;;  %s871_s2 = inlined_call_operand.vmem [shape: f32[24,1], index: 2, kind: input, shape index: {}]   ;;  %s872_s3 = inlined_call_operand.hbm [shape: f32[2,24,64], index: 3, kind: output, shape index: {}]  }
   0x1   :  { %10 = vsyncpa [#allocation3 + $0x1], 0  ;;  %s693_s12 = smov 0   ;;  %s695_s13 = smov 0  }
   0x2   :  { %s697_s14 = smov 0   ;;  %s699_s15 = smov 0  }
   0x3   :  { %s701_s16 = smov 0   ;;  %s703_s17 = smov 0  }
   0x4 LB: > { %s427_s18 = sadd.s32 4294967295, %s667_s17   ;;  %s428_s19 = sadd.s32 4294967294, %s667_s17   ;;  %s667_s17 = sphi %s703_s17, %s16_s17   ;;  %s663_s16 = sphi %s701_s16, %s879_s16   ;;  %s659_s15 = sphi %s699_s15, %s878_s15   ;;  %s655_s14 = sphi %s697_s14, %s877_s14   ;;  %s651_s13 = sphi %s695_s13, %s876_s13   ;;  %s647_s12 = sphi %s693_s12, %s875_s12  }
   0x5   : > { %s28_s20 = sadd.s32 1, %s663_s16  ;;  %s107_s21 = sadd.s32 1, %s655_s14 }
   0x6   : > { %p30_p0 = scmp.ge.s32.totalorder %s28_s20, 2  ;;  %p117_p1 = scmp.ne.s32.totalorder %s655_s14, %s651_s13 }
   0x7   : > { %p118_p2 = scmp.eq.s32.totalorder %s427_s18, 1  ;;  %p123_p3 = scmp.ne.s32.totalorder %s651_s13, %s647_s12 }
   0x8   : > { %s881_s20 = smov (%p30_p0, %s28_s20), 0  ;;  %p124_p5 = scmp.eq.s32.totalorder %s428_s19, 1 }
   0x9   : > { %p733_p4 = por %p118_p2, %p117_p1  ;;  %s102_s23 = ssub.s32 %s663_s16, %s881_s20 }
   0xa   : > { %p431_p6 = scmp.ge.s32.totalorder %s667_s17, 1  ;;  %p105_p7 = scmp.eq.s32.totalorder %s102_s23, 0 }
   0xb   : > { %p740_p8 = por %p124_p5, %p123_p3  ;;  %p159_p9 = scmp.lt.s32.totalorder %s667_s17, 3 }
   0xc   : > { %s746_s25 = scalar_select %p105_p7, %s655_s14, %s107_s21  }
   0xd   : > { %p160_p10 = pnand %p431_p6, %p159_p9 }
   0xe   : > { %p186_p11 = scmp.lt.s32.totalorder (!%p160_p10), %s659_s15, 1  ;;  %v195_v0 = vld [vmem:[%s870_s1 + $0x8] sm:$0xff] (!%p160_p10)  ;;  %v197_v1 = vld [vmem:[%s870_s1 + $0x18] sm:$0xff] (!%p160_p10)  ;;  %v669_v2 = vmov (!%p160_p10), 0   ;;  %v232_v3 = vld [vmem:[%s871_s2] sm:$0xff] (!%p160_p10)  ;;  %s183_s5 = sand.u32 (!%p160_p10), 1, %s651_s13  }
   0xf   : > { %163 = sbr.rel (%p160_p10) target bundleno = 297 (0x129), region = 32  ;;  %314 = vmatprep.mubr.f32.mxu0 (!%p160_p10), %v195_v0  ;;  %319 = vmatprep.mubr.f32.mxu1 (!%p160_p10), %v197_v1  ;;  %v234_v4 = vld [vmem:[%s871_s2 + $0x10] sm:$0xff] (!%p160_p10)  ;;  %v233_v5 = vld [vmem:[%s871_s2 + $0x8] sm:$0xff] (!%p160_p10)  ;;  %v194_v54 = vld [vmem:[%s870_s1] sm:$0xff] (!%p160_p10)  ;;  %vm330_vm0 = vcmask (!%p160_p10), 523264   ;;  %s823_s18 = scalar_lea.sflag (!%p160_p10), [#allocation3], %s183_s5 }
  0x10   : > { %587 = vset.pattern.permute.xlu0 (!%p160_p10), %v669_v2  ;;  %588 = vset.pattern.permute.xlu1 (!%p160_p10), %v669_v2  ;;  %v196_v55 = vld [vmem:[%s870_s1 + $0x10] sm:$0xff] (!%p160_p10)  ;;  %v199_v56 = vld [vmem:[%s870_s1 + $0x28] sm:$0xff] (!%p160_p10)  ;;  %v198_v57 = vld [vmem:[%s870_s1 + $0x20] sm:$0xff] (!%p160_p10)  ;;  %s527_s6 = smul.u32 (!%p160_p10), 24, %s183_s5  ;;  %s670_s21 = smov (!%p160_p10), [#allocation2]  }
  0x11   : > { %237 = vperm.xlu0 (!%p160_p10), %587, %v232_v3   ;;  %247 = vperm.xlu1 (!%p160_p10), %588, %v234_v4   ;;  %s528_s7 = smul.u32 (!%p160_p10), 384, %s659_s15  ;;  %s593_s23 = sshll.u32 (!%p160_p10), %s670_s21, 4  ;;  %s594_s23 = int_to_ptr.vmem [resolvable:$false] %s593_s23 }
  0x12   : > { %s595_s26 = scalar_lea.vmem (!%p160_p10), %s594_s23, 768 }
  0x15   : > { %242 = vperm.xlu0 (!%p160_p10), %587, %v233_v5  }
  0x16   : > { %s187_s30 = scalar_select %p186_p11, %s659_s15, 1 }
  0x17   : > { %s821_s15 = scalar_lea.hbm %s872_s3, %s528_s7 }
  0x18   : > { %s437_s8 = sshll.u32 %s187_s30, 8 }
  0x19   : > { %s768_s19 = scalar_lea.vmem %s869_s0, %s437_s8  ;;  %s185_s8 = scalar_lea.vmem [#allocation2], %s527_s6 }
  0x1a   : > { %v216_v6 = vld [vmem:[%s768_s19 + $0x80] sm:$0xff]  ;;  %v217_v7 = vld [vmem:[%s768_s19 + $0x88] sm:$0xff]  ;;  %v218_v11 = vld [vmem:[%s768_s19 + $0x90] sm:$0xff]  ;;  %s349_s9 = sshll.u32 %s185_s8, 4  ;;  %s816_s9 = int_to_ptr.vmem [resolvable:$true] %s349_s9 }
  0x1b   : > { %v200_v8 = vld [vmem:[%s768_s19] sm:$0xff]  ;;  %v479_v9 = vpack.c.bf16 %v217_v7, %v216_v6  ;;  %v201_v10 = vld [vmem:[%s768_s19 + $0x8] sm:$0xff]  ;;  %v219_v12 = vld [vmem:[%s768_s19 + $0x98] sm:$0xff]  ;;  %p596_p1 = scmp.lt.s32.totalorder %s816_s9, %s594_s23 }
  0x1c   : > { %v481_v13 = vpack.c.bf16 %v201_v10, %v200_v8  ;;  %v483_v14 = vpack.c.bf16 %v219_v12, %v218_v11  ;;  %v202_v15 = vld [vmem:[%s768_s19 + $0x10] sm:$0xff]  ;;  %v203_v16 = vld [vmem:[%s768_s19 + $0x18] sm:$0xff]  ;;  %v220_v17 = vld [vmem:[%s768_s19 + $0xa0] sm:$0xff] }
  0x1d   : > { %480 = vmatprep.subr.bf16.mxu0 %v479_v9  ;;  %511 = vmatprep.subr.bf16.mxu1 %v479_v9  ;;  %v221_v18 = vld [vmem:[%s768_s19 + $0xa8] sm:$0xff]  ;;  %v485_v19 = vpack.c.bf16 %v203_v16, %v202_v15  ;;  %v204_v21 = vld [vmem:[%s768_s19 + $0x20] sm:$0xff]  ;;  %v222_v23 = vld [vmem:[%s768_s19 + $0xb0] sm:$0xff] }
  0x1e   : > { %482 = vmatpush3.bf16.msra.mxu0 %v481_v13  ;;  %519 = vmatpush3.bf16.msra.mxu1 %v481_v13  ;;  %v487_v20 = vpack.c.bf16 %v221_v18, %v220_v17  ;;  %v205_v22 = vld [vmem:[%s768_s19 + $0x28] sm:$0xff]  ;;  %v223_v24 = vld [vmem:[%s768_s19 + $0xb8] sm:$0xff]  ;;  %v206_v27 = vld [vmem:[%s768_s19 + $0x30] sm:$0xff] }
  0x1f   : > { %484 = vmatprep.subr.bf16.mxu0 %v483_v14  ;;  %512 = vmatprep.subr.bf16.mxu1 %v483_v14  ;;  %v489_v25 = vpack.c.bf16 %v205_v22, %v204_v21  ;;  %v491_v26 = vpack.c.bf16 %v223_v24, %v222_v23  ;;  %v207_v28 = vld [vmem:[%s768_s19 + $0x38] sm:$0xff]  ;;  %v224_v29 = vld [vmem:[%s768_s19 + $0xc0] sm:$0xff]  ;;  %v225_v30 = vld [vmem:[%s768_s19 + $0xc8] sm:$0xff] }
  0x20   : > { %v493_v31 = vpack.c.bf16 %v207_v28, %v206_v27  ;;  %v495_v32 = vpack.c.bf16 %v225_v30, %v224_v29  ;;  %v208_v33 = vld [vmem:[%s768_s19 + $0x40] sm:$0xff]  ;;  %v209_v34 = vld [vmem:[%s768_s19 + $0x48] sm:$0xff]  ;;  %v226_v35 = vld [vmem:[%s768_s19 + $0xd0] sm:$0xff] }
  0x21   : > { %v227_v36 = vld [vmem:[%s768_s19 + $0xd8] sm:$0xff]  ;;  %v497_v37 = vpack.c.bf16 %v209_v34, %v208_v33  ;;  %v210_v39 = vld [vmem:[%s768_s19 + $0x50] sm:$0xff]  ;;  %v228_v41 = vld [vmem:[%s768_s19 + $0xe0] sm:$0xff] }
  0x22   : > { %486 = vmatpush3.bf16.msra.mxu0 %v485_v19  ;;  %520 = vmatpush3.bf16.msra.mxu1 %v485_v19  ;;  %v499_v38 = vpack.c.bf16 %v227_v36, %v226_v35  ;;  %v211_v40 = vld [vmem:[%s768_s19 + $0x58] sm:$0xff]  ;;  %v229_v42 = vld [vmem:[%s768_s19 + $0xe8] sm:$0xff]  ;;  %v212_v45 = vld [vmem:[%s768_s19 + $0x60] sm:$0xff] }
  0x23   : > { %488 = vmatprep.subr.bf16.mxu0 %v487_v20  ;;  %513 = vmatprep.subr.bf16.mxu1 %v487_v20  ;;  %v501_v43 = vpack.c.bf16 %v211_v40, %v210_v39  ;;  %v503_v44 = vpack.c.bf16 %v229_v42, %v228_v41  ;;  %v213_v46 = vld [vmem:[%s768_s19 + $0x68] sm:$0xff]  ;;  %v230_v47 = vld [vmem:[%s768_s19 + $0xf0] sm:$0xff]  ;;  %v231_v48 = vld [vmem:[%s768_s19 + $0xf8] sm:$0xff] }
  0x24   : > { %v505_v49 = vpack.c.bf16 %v213_v46, %v212_v45  ;;  %v507_v50 = vpack.c.bf16 %v231_v48, %v230_v47  ;;  %v214_v51 = vld [vmem:[%s768_s19 + $0x70] sm:$0xff]  ;;  %v215_v52 = vld [vmem:[%s768_s19 + $0x78] sm:$0xff]  ;;  %s589_s19 = scalar_lea.vmem %s816_s9, 384 }
  0x25   : > { %v509_v53 = vpack.c.bf16 %v215_v52, %v214_v51  ;;  %p590_p12 = scmp.ne.s32.totalorder %s816_s9, %s589_s19  ;;  %p597_p2 = scmp.lt.s32.totalorder %s595_s26, %s589_s19 }
  0x26   : > { %490 = vmatpush3.bf16.msra.mxu0 %v489_v25  ;;  %521 = vmatpush3.bf16.msra.mxu1 %v489_v25 }
  0x27   : > { %492 = vmatprep.subr.bf16.mxu0 %v491_v26  ;;  %514 = vmatprep.subr.bf16.mxu1 %v491_v26  ;;  %p591_p13 = pnand %p590_p12, %p733_p4  ;;  %p598_p3 = por %p597_p2, %p596_p1 }
  0x29   : > { %p592_p0 = pneg %p591_p13 }
  0x2a   : > { %494 = vmatpush3.bf16.msra.mxu0 %v493_v31  ;;  %522 = vmatpush3.bf16.msra.mxu1 %v493_v31 }
  0x2b   : > { %496 = vmatprep.subr.bf16.mxu0 %v495_v32  ;;  %515 = vmatprep.subr.bf16.mxu1 %v495_v32  ;;  %p599_p5 = pnand %p598_p3, %p592_p0 }
  0x2e   : > { %498 = vmatpush3.bf16.msra.mxu0 %v497_v37  ;;  %523 = vmatpush3.bf16.msra.mxu1 %v497_v37 }
  0x2f   : > { %500 = vmatprep.subr.bf16.mxu0 %v499_v38  ;;  %516 = vmatprep.subr.bf16.mxu1 %v499_v38 }
  0x32   : > { %502 = vmatpush3.bf16.msra.mxu0 %v501_v43  ;;  %524 = vmatpush3.bf16.msra.mxu1 %v501_v43 }
  0x33   : > { %504 = vmatprep.subr.bf16.mxu0 %v503_v44  ;;  %517 = vmatprep.subr.bf16.mxu1 %v503_v44 }
  0x36   : > { %506 = vmatpush3.bf16.msra.mxu0 %v505_v49  ;;  %525 = vmatpush3.bf16.msra.mxu1 %v505_v49 }
  0x37   : > { %508 = vmatprep.subr.bf16.mxu0 %v507_v50  ;;  %518 = vmatprep.subr.bf16.mxu1 %v507_v50 }
  0x3a   : > { %510 = vmatpush3.bf16.msra.mxu0 %v509_v53  ;;  %526 = vmatpush3.bf16.msra.mxu1 %v509_v53 }
  0x3d   : > { %315 = vmatmul.mubr.f32.vlgmr.msra.gmra.mrb[0].mxu0 %v194_v54  ;;  %320 = vmatmul.mubr.f32.vlgmr.msra.gmra.mrb[0].mxu1 %v196_v55 }
  0x3e   : > { %324 = vmatprep.mubr.f32.mxu1 %v199_v56 }
  0x41   : > { %325 = vmatmul.mubr.f32.gmra.mrb[2].mxu1 %v198_v57 }
  0x90   : > { %v238_v58 = vpop.permute.xlu0 %237  ;;  %v248_v6 = vpop.permute.xlu1 %247 }
  0x94   : > { %v243_v59 = vpop.permute.xlu0 %242 }
 0x110   : > { %v470_v60 = vpop.f32.mrb[0].mxu0  ;;  %v473_v61 = vpop.f32.mrb[0].mxu1 }
 0x111   : > { %v471_v62 = vpop.f32.mrb[1].mxu0  ;;  %v474_v63 = vpop.f32.mrb[1].mxu1 }
 0x112   : > { %v472_v0 = vadd.f32 %v471_v62, %v470_v60  ;;  %v475_v1 = vadd.f32 %v474_v63, %v473_v61 }
 0x114   : > { %v317_v2 = vadd.f32 %v472_v0, %v238_v58  ;;  %v322_v3 = vadd.f32 %v475_v1, %v243_v59  ;;  %v476_v4 = vpop.f32.mrb[2].mxu1 }
 0x115   : > { %v477_v5 = vpop.f32.mrb[3].mxu1 }
 0x116   : > { %331 = vst.msk [vmem:[%s185_s8] sm:$0xff] %vm330_vm0, %v317_v2  ;;  %332 = vst.msk [vmem:[%s185_s8 + $0x8] sm:$0xff] %vm330_vm0, %v322_v3  ;;  %v478_v7 = vadd.f32 %v477_v5, %v476_v4 }
 0x118   : > { %v327_v8 = vadd.f32 %v478_v7, %v248_v6 }
 0x11a   : > { %333 = vst.msk [vmem:[%s185_s8 + $0x10] sm:$0xff] %vm330_vm0, %v327_v8 }
 0x11b   : > { %602 = shalt.err (!%p599_p5)
}
 0x11c   : > { %s603_s27 = scalar_lea.hbm %s821_s15, 384  ;;  %s607_s30 = scalar_lea.hbm %s872_s3, 768 }
 0x11d   : > { %p604_p6 = scmp.ne.s32.totalorder %s821_s15, %s603_s27  ;;  %p608_p10 = scmp.lt.u32.totalorder %s821_s15, %s872_s3 }
 0x11e   : > { %p609_p11 = scmp.lt.u32.totalorder %s607_s30, %s603_s27  ;;  %p611_p13 = scmp.lt.u32.totalorder %s603_s27, %s821_s15 }
 0x11f   : > { %p605_p7 = pnand %p604_p6, %p733_p4 }
 0x120   : > { %p610_p12 = por %p609_p11, %p608_p10 }
 0x121   : > { %p606_p9 = pneg %p605_p7 }
 0x122   : > { %p612_p0 = por %p611_p13, %p610_p12 }
 0x124   : > { %p613_p1 = pnand %p612_p0, %p606_p9 }
 0x126   : > { %616 = shalt.err (!%p613_p1)
}
 0x127   : > { %s671_s6 = smov 128   ;;  %s672_s7 = smov 8  }
 0x128   : > { %529 = dma.vmem_to_hbm [thread:$0]  (%p733_p4), %s816_s9, 384, %s821_s15, %s823_s18, %s671_s6, %s671_s6, %s672_s7  }
 0x129 PF: > { %p535_p2 = scmp.ge.s32.totalorder %s667_s17, 2  ;;  %s364_s8 = sand.u32 1, %s647_s12  }
 0x12a   : > { %s365_s10 = scalar_lea.sflag [#allocation3], %s364_s8 }
 0x12b   : > { %p532_p3 = pnand %p535_p2, %p740_p8 }
 0x12d   : > { %642 = dma.done.wait (!%p532_p3), %s365_s10, 384  }
 0x12e   : > { %644 = vsyncadd (!%p532_p3), %s365_s10, 4294966912  ;;  %s16_s17 = sadd.s32 1, %s667_s17   ;;  %s875_s12 = smov %s651_s13 }
 0x12f   : > { %p13_p5 = scmp.ge.s32.totalorder %s16_s17, 4   ;;  %s876_s13 = smov %s655_s14 }
 0x130   : > { %s877_s14 = smov %s746_s25  ;;  %s878_s15 = smov %s663_s16 }
 0x131   : > { %s879_s16 = smov %s881_s20  ;;  %15 = sbr.rel (!%p13_p5) target bundleno = 4 (0x4), region = 67 }
 0x138   :  { %370 = vsyncpa [#allocation3], 1 }
 0x139   :  { %372 = vsyncpa [#allocation3 + $0x1], 1 }

</bundles_post_ra>
